<compile_context>
chip_gen: v7x
topology: tpu7x:2x2x1
jax: 0.10.0
libtpu: 0.0.40
codegen_flags: <defaults>
</compile_context>

<pallas_src>
import functools

import jax
import jax.numpy as jnp
from jax import lax
from jax.experimental import pallas as pl
from jax.experimental.pallas import tpu as pltpu

LANE = 128


def lstm_fc_kernel(tok_ref, embed_ref, h0_ref, c0_ref, w_ref, b_ref, fcw_ref,
                   fcb_ref, out_ref, h_out_ref, c_out_ref, xh_scr):
    L, B, H = h0_ref.shape
    V = embed_ref.shape[0]

    # ---- Embedding gather fused into the kernel: one-hot(tokens) @ table on the
    # MXU writes x directly into lanes [0, H) of the [x ; h] scratch.
    toks = tok_ref[...]                                           # (B, 1) int32
    onehot = (lax.broadcasted_iota(jnp.int32, (B, V), 1) == toks).astype(jnp.float32)
    xh_scr[:, 0:H] = jnp.dot(onehot, embed_ref[...],
                             preferred_element_type=jnp.float32)  # (B, H)

    # Lane-mask selecting tanh for gate g (lanes [2H, 3H)) vs sigmoid for i/f/o on
    # the fused (B, 4H) gate tile.  Hoisted out of the layer loop.
    lane_idx = lax.broadcasted_iota(jnp.int32, (B, 4 * H), 1)
    g_mask = (lane_idx >= 2 * H) & (lane_idx < 3 * H)

    def layer(l, carry):
        # [x ; h] operand: lanes [0,H) already hold x (embedding or previous h).
        xh_scr[:, H:2 * H] = h0_ref[l]
        xh = xh_scr[...]                                          # (B, 2H)
        c = c0_ref[l]                                             # (B, H)

        # One lane-dense matmul per layer: (B,2H)@(2H,4H) -> (B,4H), 4H == 128.
        z = (jnp.dot(xh, w_ref[l], preferred_element_type=jnp.float32)
             + b_ref[l])                                          # bias pre-combined
        act = jnp.where(g_mask, jnp.tanh(z), jax.nn.sigmoid(z))   # (B, 4H)

        i_g = act[:, 0 * H:1 * H]                                 # PyTorch order i,f,g,o
        f_g = act[:, 1 * H:2 * H]
        g_g = act[:, 2 * H:3 * H]
        o_g = act[:, 3 * H:4 * H]

        c_new = f_g * c + i_g * g_g
        h_new = o_g * jnp.tanh(c_new)

        h_out_ref[l] = h_new                                      # in place (aliased)
        c_out_ref[l] = c_new                                      # in place (aliased)
        xh_scr[:, 0:H] = h_new                                    # feeds next layer / FC
        return carry

    lax.fori_loop(0, L, layer, 0, unroll=True)

    # Final FC once on the last layer's hidden state (seq_len == 1 -> out == h_L).
    # fcw/fcb are padded to a 128-lane multiple -> unmasked, lane-dense store.
    h_last = xh_scr[:, 0:H]
    out_ref[...] = (jnp.dot(h_last, fcw_ref[...], preferred_element_type=jnp.float32)
                    + fcb_ref[...])


def pack_params(params, num_layers, hidden_size, lane=LANE):
    """Re-pack PyTorch-layout LSTM/FC params into the kernel's fused, lane-dense layout."""
    L, H = num_layers, hidden_size
    # PyTorch: w_ih/w_hh are (L, 4H, in) with gate blocks [i, f, g, o] along rows.
    # Fuse K ([x ; h]) and keep the 4 gates along the output/lane dim (4H = 128).
    w_ih = jnp.swapaxes(params["w_ih"], -1, -2)                   # (L, H,  4H)
    w_hh = jnp.swapaxes(params["w_hh"], -1, -2)                   # (L, H,  4H)
    w = jnp.concatenate([w_ih, w_hh], axis=1)                     # (L, 2H, 4H)
    b = (params["b_ih"] + params["b_hh"]).reshape(L, 1, 4 * H)    # (L, 1,  4H)

    out_size = params["fc_w"].shape[0]
    out_pad = ((out_size + lane - 1) // lane) * lane              # lane-dense FC output
    fc_w = jnp.zeros((H, out_pad), jnp.float32).at[:, :out_size].set(params["fc_w"].T)
    fc_b = jnp.zeros((1, out_pad), jnp.float32).at[:, :out_size].set(
        params["fc_b"].reshape(1, -1))
    return {"embed": params["embed"], "w": w, "b": b,
            "fc_w": fc_w, "fc_b": fc_b, "out_size": out_size}


@functools.partial(jax.jit, static_argnames=("out_size",), donate_argnums=(1, 2))
def _rnn_step(x_tokens, hidden, cell, embed, w, b, fc_w, fc_b, *, out_size):
    L, B, H = hidden.shape
    out_pad = fc_w.shape[-1]
    vmem = pl.BlockSpec(memory_space=pltpu.MemorySpace.VMEM)

    out_p, h_new, c_new = pl.pallas_call(
        lstm_fc_kernel,
        out_shape=(
            jax.ShapeDtypeStruct((B, out_pad), jnp.float32),
            jax.ShapeDtypeStruct((L, B, H), jnp.float32),
            jax.ShapeDtypeStruct((L, B, H), jnp.float32),
        ),
        in_specs=[vmem] * 8,
        out_specs=(vmem, vmem, vmem),
        scratch_shapes=[pltpu.VMEM((B, 2 * H), jnp.float32)],
        # In-place state update: hidden -> h_out, cell -> c_out (safe: layer l reads
        # index l before writing it and never re-reads it).
        input_output_aliases={2: 1, 3: 2},
    )(x_tokens.reshape(B, 1), embed, hidden, cell, w, b, fc_w, fc_b)
    return out_p[:, :out_size], (h_new, c_new)


def rnn_forward(x_tokens, hidden, cell, packed):
    return _rnn_step(x_tokens, hidden, cell, packed["embed"], packed["w"],
                     packed["b"], packed["fc_w"], packed["fc_b"],
                     out_size=packed["out_size"])


def rnn_forward_ref(x_tokens, hidden, cell, params):
    """Pure-JAX reference with PyTorch LSTM semantics (seq_len=1), PyTorch layouts."""
    x = params["embed"][x_tokens]
    L, _, H = hidden.shape
    hs, cs = [], []
    for l in range(L):
        gates = (x @ params["w_ih"][l].T + params["b_ih"][l]
                 + hidden[l] @ params["w_hh"][l].T + params["b_hh"][l])
        i = jax.nn.sigmoid(gates[:, 0 * H:1 * H])
        f = jax.nn.sigmoid(gates[:, 1 * H:2 * H])
        g = jnp.tanh(gates[:, 2 * H:3 * H])
        o = jax.nn.sigmoid(gates[:, 3 * H:4 * H])
        c = f * cell[l] + i * g
        h = o * jnp.tanh(c)
        hs.append(h)
        cs.append(c)
        x = h
    out = x @ params["fc_w"].T + params["fc_b"]
    return out, (jnp.stack(hs), jnp.stack(cs))


if __name__ == "__main__":
    # Small, deterministic configuration consistent with the module.
    vocab_size = 64        # input_size (num_embeddings)
    hidden_size = 32
    num_layers = 2
    output_size = 64
    batch = 2

    key = jax.random.PRNGKey(0)
    keys = jax.random.split(key, 8)
    scale = 1.0 / jnp.sqrt(hidden_size)

    # Parameters stored in PyTorch layout (w_*: (L, 4H, in); fc_w: (out, in)).
    params = {
        "embed": jax.random.normal(keys[0], (vocab_size, hidden_size), jnp.float32),
        "w_ih": jax.random.uniform(keys[1], (num_layers, 4 * hidden_size, hidden_size),
                                   jnp.float32, -scale, scale),
        "w_hh": jax.random.uniform(keys[2], (num_layers, 4 * hidden_size, hidden_size),
                                   jnp.float32, -scale, scale),
        "b_ih": jax.random.uniform(keys[3], (num_layers, 4 * hidden_size),
                                   jnp.float32, -scale, scale),
        "b_hh": jax.random.uniform(keys[4], (num_layers, 4 * hidden_size),
                                   jnp.float32, -scale, scale),
        "fc_w": jax.random.uniform(keys[5], (output_size, hidden_size),
                                   jnp.float32, -scale, scale),
        "fc_b": jax.random.uniform(keys[6], (output_size,),
                                   jnp.float32, -scale, scale),
    }

    # Inputs: integer token ids, zero-initialized hidden/cell (init_hidden).
    x_tokens = jax.random.randint(keys[7], (batch,), 0, vocab_size, jnp.int32)
    hidden = jnp.zeros((num_layers, batch, hidden_size), jnp.float32)
    cell = jnp.zeros((num_layers, batch, hidden_size), jnp.float32)

    # Reference first (kernel donates/aliases hidden & cell for in-place update).
    out_ref, (h_ref, c_ref) = rnn_forward_ref(x_tokens, hidden, cell, params)

    packed = pack_params(params, num_layers, hidden_size)
    out, (h_new, c_new) = rnn_forward(x_tokens, hidden, cell, packed)
    jax.block_until_ready((out, h_new, c_new))

    assert out.shape == (batch, output_size)
    assert jnp.allclose(out, out_ref, atol=1e-5, rtol=1e-5)
    assert jnp.allclose(h_new, h_ref, atol=1e-5, rtol=1e-5)
    assert jnp.allclose(c_new, c_ref, atol=1e-5, rtol=1e-5)

    print("KERNEL_OK")
</pallas_src>

<mosaic_0001>
module attributes {stable_mosaic.version = 11 : i64} {
  func.func @lstm_fc_kernel(%arg0: memref<2x1xi32, #tpu.memory_space<vmem>>, %arg1: memref<64x32xf32, #tpu.memory_space<vmem>>, %arg2: memref<2x2x32xf32, #tpu.memory_space<vmem>>, %arg3: memref<2x2x32xf32, #tpu.memory_space<vmem>>, %arg4: memref<2x64x128xf32, #tpu.memory_space<vmem>>, %arg5: memref<2x1x128xf32, #tpu.memory_space<vmem>>, %arg6: memref<32x128xf32, #tpu.memory_space<vmem>>, %arg7: memref<1x128xf32, #tpu.memory_space<vmem>>, %arg8: memref<2x128xf32, #tpu.memory_space<vmem>>, %arg9: memref<2x2x32xf32, #tpu.memory_space<vmem>>, %arg10: memref<2x2x32xf32, #tpu.memory_space<vmem>>, %arg11: memref<2x64xf32, #tpu.memory_space<vmem>>) attributes {dimension_semantics = [], scalar_prefetch = 0 : i64, scratch_operands = 1 : i64, tpu.core_type = #tpu.core_type<tc>} {
    %c0 = arith.constant 0 : index
    %c0_0 = arith.constant 0 : index
    %0 = vector.load %arg0[%c0, %c0_0] : memref<2x1xi32, #tpu.memory_space<vmem>>, vector<2x1xi32>
    %1 = tpu.iota {dimensions = array<i32: 1>} : vector<2x64xi32>
    %2 = vector.broadcast %0 : vector<2x1xi32> to vector<2x64xi32>
    %3 = arith.cmpi eq, %1, %2 : vector<2x64xi32>
    %4 = arith.extui %3 : vector<2x64xi1> to vector<2x64xi32>
    %5 = arith.sitofp %4 : vector<2x64xi32> to vector<2x64xf32>
    %c0_1 = arith.constant 0 : index
    %c0_2 = arith.constant 0 : index
    %6 = vector.load %arg1[%c0_1, %c0_2] : memref<64x32xf32, #tpu.memory_space<vmem>>, vector<64x32xf32>
    %cst = arith.constant dense<0.000000e+00> : vector<2x32xf32>
    %7 = tpu.matmul %5, %6, %cst {dimension_numbers = #tpu.dot_dimension_numbers<[1], [0], [0], [1], [0, 0, 1, 1], [], []>} : vector<2x64xf32>, vector<64x32xf32>, vector<2x32xf32> -> vector<2x32xf32>
    %c0_3 = arith.constant 0 : index
    %c0_4 = arith.constant 0 : index
    %8 = vector.load %arg11[%c0_3, %c0_4] : memref<2x64xf32, #tpu.memory_space<vmem>>, vector<2x32xf32>
    tpu.vector_store %arg11[%c0_3, %c0_4], %7 {strides = array<i32>} : memref<2x64xf32, #tpu.memory_space<vmem>>, vector<2x32xf32>,
    %9 = tpu.iota {dimensions = array<i32: 1>} : vector<2x128xi32>
    %c64_i32 = arith.constant 64 : i32
    %10 = vector.broadcast %c64_i32 : i32 to vector<2x128xi32>
    %11 = arith.cmpi sge, %9, %10 : vector<2x128xi32>
    %c96_i32 = arith.constant 96 : i32
    %12 = vector.broadcast %c96_i32 : i32 to vector<2x128xi32>
    %13 = arith.cmpi slt, %9, %12 : vector<2x128xi32>
    %14 = arith.andi %11, %13 : vector<2x128xi1>
    %c0_i32 = arith.constant 0 : i32
    %15 = arith.index_cast %c0_i32 : i32 to index
    %c0_5 = arith.constant 0 : index
    %c0_6 = arith.constant 0 : index
    %16 = vector.load %arg2[%15, %c0_5, %c0_6] : memref<2x2x32xf32, #tpu.memory_space<vmem>>, vector<1x2x32xf32>
    %17 = vector.shape_cast %16 : vector<1x2x32xf32> to vector<2x32xf32>
    %c0_7 = arith.constant 0 : index
    %c32 = arith.constant 32 : index
    %18 = vector.load %arg11[%c0_7, %c32] : memref<2x64xf32, #tpu.memory_space<vmem>>, vector<2x32xf32>
    tpu.vector_store %arg11[%c0_7, %c32], %17 {strides = array<i32>} : memref<2x64xf32, #tpu.memory_space<vmem>>, vector<2x32xf32>,
    %c0_8 = arith.constant 0 : index
    %c0_9 = arith.constant 0 : index
    %19 = vector.load %arg11[%c0_8, %c0_9] : memref<2x64xf32, #tpu.memory_space<vmem>>, vector<2x64xf32>
    %20 = arith.index_cast %c0_i32 : i32 to index
    %c0_10 = arith.constant 0 : index
    %c0_11 = arith.constant 0 : index
    %21 = vector.load %arg3[%20, %c0_10, %c0_11] : memref<2x2x32xf32, #tpu.memory_space<vmem>>, vector<1x2x32xf32>
    %22 = vector.shape_cast %21 : vector<1x2x32xf32> to vector<2x32xf32>
    %23 = arith.index_cast %c0_i32 : i32 to index
    %c0_12 = arith.constant 0 : index
    %c0_13 = arith.constant 0 : index
    %24 = vector.load %arg4[%23, %c0_12, %c0_13] : memref<2x64x128xf32, #tpu.memory_space<vmem>>, vector<1x64x128xf32>
    %25 = vector.shape_cast %24 : vector<1x64x128xf32> to vector<64x128xf32>
    %cst_14 = arith.constant dense<0.000000e+00> : vector<2x128xf32>
    %26 = tpu.matmul %19, %25, %cst_14 {dimension_numbers = #tpu.dot_dimension_numbers<[1], [0], [0], [1], [0, 0, 1, 1], [], []>} : vector<2x64xf32>, vector<64x128xf32>, vector<2x128xf32> -> vector<2x128xf32>
    %27 = arith.index_cast %c0_i32 : i32 to index
    %c0_15 = arith.constant 0 : index
    %c0_16 = arith.constant 0 : index
    %28 = vector.load %arg5[%27, %c0_15, %c0_16] : memref<2x1x128xf32, #tpu.memory_space<vmem>>, vector<1x1x128xf32>
    %29 = vector.shape_cast %28 : vector<1x1x128xf32> to vector<1x128xf32>
    %30 = vector.broadcast %29 : vector<1x128xf32> to vector<2x128xf32>
    %31 = arith.addf %26, %30 : vector<2x128xf32>
    %32 = math.tanh %31 : vector<2x128xf32>
    %33 = arith.negf %31 : vector<2x128xf32>
    %34 = math.exp %33 : vector<2x128xf32>
    %cst_17 = arith.constant 1.000000e+00 : f32
    %35 = vector.broadcast %cst_17 : f32 to vector<2x128xf32>
    %36 = arith.addf %35, %34 : vector<2x128xf32>
    %37 = arith.divf %35, %36 : vector<2x128xf32>
    %38 = arith.select %14, %32, %37 : vector<2x128xi1>, vector<2x128xf32>
    %39 = vector.extract_strided_slice %38 {offsets = [0, 0], sizes = [2, 32], strides = [1, 1]} : vector<2x128xf32> to vector<2x32xf32>
    %40 = vector.extract_strided_slice %38 {offsets = [0, 32], sizes = [2, 32], strides = [1, 1]} : vector<2x128xf32> to vector<2x32xf32>
    %41 = vector.extract_strided_slice %38 {offsets = [0, 64], sizes = [2, 32], strides = [1, 1]} : vector<2x128xf32> to vector<2x32xf32>
    %42 = vector.extract_strided_slice %38 {offsets = [0, 96], sizes = [2, 32], strides = [1, 1]} : vector<2x128xf32> to vector<2x32xf32>
    %43 = arith.mulf %40, %22 : vector<2x32xf32>
    %44 = arith.mulf %39, %41 : vector<2x32xf32>
    %45 = arith.addf %43, %44 : vector<2x32xf32>
    %46 = math.tanh %45 : vector<2x32xf32>
    %47 = arith.mulf %42, %46 : vector<2x32xf32>
    %48 = arith.index_cast %c0_i32 : i32 to index
    %c0_18 = arith.constant 0 : index
    %c0_19 = arith.constant 0 : index
    %49 = vector.load %arg9[%48, %c0_18, %c0_19] : memref<2x2x32xf32, #tpu.memory_space<vmem>>, vector<1x2x32xf32>
    %50 = vector.shape_cast %49 : vector<1x2x32xf32> to vector<2x32xf32>
    %51 = vector.shape_cast %47 : vector<2x32xf32> to vector<1x2x32xf32>
    tpu.vector_store %arg9[%48, %c0_18, %c0_19], %51 {strides = array<i32>} : memref<2x2x32xf32, #tpu.memory_space<vmem>>, vector<1x2x32xf32>,
    %52 = arith.index_cast %c0_i32 : i32 to index
    %c0_20 = arith.constant 0 : index
    %c0_21 = arith.constant 0 : index
    %53 = vector.load %arg10[%52, %c0_20, %c0_21] : memref<2x2x32xf32, #tpu.memory_space<vmem>>, vector<1x2x32xf32>
    %54 = vector.shape_cast %53 : vector<1x2x32xf32> to vector<2x32xf32>
    %55 = vector.shape_cast %45 : vector<2x32xf32> to vector<1x2x32xf32>
    tpu.vector_store %arg10[%52, %c0_20, %c0_21], %55 {strides = array<i32>} : memref<2x2x32xf32, #tpu.memory_space<vmem>>, vector<1x2x32xf32>,
    %c0_22 = arith.constant 0 : index
    %c0_23 = arith.constant 0 : index
    %56 = vector.load %arg11[%c0_22, %c0_23] : memref<2x64xf32, #tpu.memory_space<vmem>>, vector<2x32xf32>
    tpu.vector_store %arg11[%c0_22, %c0_23], %47 {strides = array<i32>} : memref<2x64xf32, #tpu.memory_space<vmem>>, vector<2x32xf32>,
    %c1_i32 = arith.constant 1 : i32
    %57 = arith.index_cast %c1_i32 : i32 to index
    %c0_24 = arith.constant 0 : index
    %c0_25 = arith.constant 0 : index
    %58 = vector.load %arg2[%57, %c0_24, %c0_25] : memref<2x2x32xf32, #tpu.memory_space<vmem>>, vector<1x2x32xf32>
    %59 = vector.shape_cast %58 : vector<1x2x32xf32> to vector<2x32xf32>
    %c0_26 = arith.constant 0 : index
    %c32_27 = arith.constant 32 : index
    %60 = vector.load %arg11[%c0_26, %c32_27] : memref<2x64xf32, #tpu.memory_space<vmem>>, vector<2x32xf32>
    tpu.vector_store %arg11[%c0_26, %c32_27], %59 {strides = array<i32>} : memref<2x64xf32, #tpu.memory_space<vmem>>, vector<2x32xf32>,
    %c0_28 = arith.constant 0 : index
    %c0_29 = arith.constant 0 : index
    %61 = vector.load %arg11[%c0_28, %c0_29] : memref<2x64xf32, #tpu.memory_space<vmem>>, vector<2x64xf32>
    %62 = arith.index_cast %c1_i32 : i32 to index
    %c0_30 = arith.constant 0 : index
    %c0_31 = arith.constant 0 : index
    %63 = vector.load %arg3[%62, %c0_30, %c0_31] : memref<2x2x32xf32, #tpu.memory_space<vmem>>, vector<1x2x32xf32>
    %64 = vector.shape_cast %63 : vector<1x2x32xf32> to vector<2x32xf32>
    %65 = arith.index_cast %c1_i32 : i32 to index
    %c0_32 = arith.constant 0 : index
    %c0_33 = arith.constant 0 : index
    %66 = vector.load %arg4[%65, %c0_32, %c0_33] : memref<2x64x128xf32, #tpu.memory_space<vmem>>, vector<1x64x128xf32>
    %67 = vector.shape_cast %66 : vector<1x64x128xf32> to vector<64x128xf32>
    %cst_34 = arith.constant dense<0.000000e+00> : vector<2x128xf32>
    %68 = tpu.matmul %61, %67, %cst_34 {dimension_numbers = #tpu.dot_dimension_numbers<[1], [0], [0], [1], [0, 0, 1, 1], [], []>} : vector<2x64xf32>, vector<64x128xf32>, vector<2x128xf32> -> vector<2x128xf32>
    %69 = arith.index_cast %c1_i32 : i32 to index
    %c0_35 = arith.constant 0 : index
    %c0_36 = arith.constant 0 : index
    %70 = vector.load %arg5[%69, %c0_35, %c0_36] : memref<2x1x128xf32, #tpu.memory_space<vmem>>, vector<1x1x128xf32>
    %71 = vector.shape_cast %70 : vector<1x1x128xf32> to vector<1x128xf32>
    %72 = vector.broadcast %71 : vector<1x128xf32> to vector<2x128xf32>
    %73 = arith.addf %68, %72 : vector<2x128xf32>
    %74 = math.tanh %73 : vector<2x128xf32>
    %75 = arith.negf %73 : vector<2x128xf32>
    %76 = math.exp %75 : vector<2x128xf32>
    %cst_37 = arith.constant 1.000000e+00 : f32
    %77 = vector.broadcast %cst_37 : f32 to vector<2x128xf32>
    %78 = arith.addf %77, %76 : vector<2x128xf32>
    %79 = arith.divf %77, %78 : vector<2x128xf32>
    %80 = arith.select %14, %74, %79 : vector<2x128xi1>, vector<2x128xf32>
    %81 = vector.extract_strided_slice %80 {offsets = [0, 0], sizes = [2, 32], strides = [1, 1]} : vector<2x128xf32> to vector<2x32xf32>
    %82 = vector.extract_strided_slice %80 {offsets = [0, 32], sizes = [2, 32], strides = [1, 1]} : vector<2x128xf32> to vector<2x32xf32>
    %83 = vector.extract_strided_slice %80 {offsets = [0, 64], sizes = [2, 32], strides = [1, 1]} : vector<2x128xf32> to vector<2x32xf32>
    %84 = vector.extract_strided_slice %80 {offsets = [0, 96], sizes = [2, 32], strides = [1, 1]} : vector<2x128xf32> to vector<2x32xf32>
    %85 = arith.mulf %82, %64 : vector<2x32xf32>
    %86 = arith.mulf %81, %83 : vector<2x32xf32>
    %87 = arith.addf %85, %86 : vector<2x32xf32>
    %88 = math.tanh %87 : vector<2x32xf32>
    %89 = arith.mulf %84, %88 : vector<2x32xf32>
    %90 = arith.index_cast %c1_i32 : i32 to index
    %c0_38 = arith.constant 0 : index
    %c0_39 = arith.constant 0 : index
    %91 = vector.load %arg9[%90, %c0_38, %c0_39] : memref<2x2x32xf32, #tpu.memory_space<vmem>>, vector<1x2x32xf32>
    %92 = vector.shape_cast %91 : vector<1x2x32xf32> to vector<2x32xf32>
    %93 = vector.shape_cast %89 : vector<2x32xf32> to vector<1x2x32xf32>
    tpu.vector_store %arg9[%90, %c0_38, %c0_39], %93 {strides = array<i32>} : memref<2x2x32xf32, #tpu.memory_space<vmem>>, vector<1x2x32xf32>,
    %94 = arith.index_cast %c1_i32 : i32 to index
    %c0_40 = arith.constant 0 : index
    %c0_41 = arith.constant 0 : index
    %95 = vector.load %arg10[%94, %c0_40, %c0_41] : memref<2x2x32xf32, #tpu.memory_space<vmem>>, vector<1x2x32xf32>
    %96 = vector.shape_cast %95 : vector<1x2x32xf32> to vector<2x32xf32>
    %97 = vector.shape_cast %87 : vector<2x32xf32> to vector<1x2x32xf32>
    tpu.vector_store %arg10[%94, %c0_40, %c0_41], %97 {strides = array<i32>} : memref<2x2x32xf32, #tpu.memory_space<vmem>>, vector<1x2x32xf32>,
    %c0_42 = arith.constant 0 : index
    %c0_43 = arith.constant 0 : index
    %98 = vector.load %arg11[%c0_42, %c0_43] : memref<2x64xf32, #tpu.memory_space<vmem>>, vector<2x32xf32>
    tpu.vector_store %arg11[%c0_42, %c0_43], %89 {strides = array<i32>} : memref<2x64xf32, #tpu.memory_space<vmem>>, vector<2x32xf32>,
    %c2_i32 = arith.constant 2 : i32
    %c0_44 = arith.constant 0 : index
    %c0_45 = arith.constant 0 : index
    %99 = vector.load %arg11[%c0_44, %c0_45] : memref<2x64xf32, #tpu.memory_space<vmem>>, vector<2x32xf32>
    %c0_46 = arith.constant 0 : index
    %c0_47 = arith.constant 0 : index
    %100 = vector.load %arg6[%c0_46, %c0_47] : memref<32x128xf32, #tpu.memory_space<vmem>>, vector<32x128xf32>
    %cst_48 = arith.constant dense<0.000000e+00> : vector<2x128xf32>
    %101 = tpu.matmul %99, %100, %cst_48 {dimension_numbers = #tpu.dot_dimension_numbers<[1], [0], [0], [1], [0, 0, 1, 1], [], []>} : vector<2x32xf32>, vector<32x128xf32>, vector<2x128xf32> -> vector<2x128xf32>
    %c0_49 = arith.constant 0 : index
    %c0_50 = arith.constant 0 : index
    %102 = vector.load %arg7[%c0_49, %c0_50] : memref<1x128xf32, #tpu.memory_space<vmem>>, vector<1x128xf32>
    %103 = vector.broadcast %102 : vector<1x128xf32> to vector<2x128xf32>
    %104 = arith.addf %101, %103 : vector<2x128xf32>
    %c0_51 = arith.constant 0 : index
    %c0_52 = arith.constant 0 : index
    %105 = vector.load %arg8[%c0_51, %c0_52] : memref<2x128xf32, #tpu.memory_space<vmem>>, vector<2x128xf32>
    tpu.vector_store %arg8[%c0_51, %c0_52], %104 {strides = array<i32>} : memref<2x128xf32, #tpu.memory_space<vmem>>, vector<2x128xf32>,
    return
  }
}

</mosaic_0001>

<bundles_post_ra>
// kernel: _rnn_step.1
= control target key start
LH: loop header
LB: loop body
LE: loop exit
PB: predicated region body
PF: predicated region fallthrough
CT: control target
= control target key end

     0   :  { %16 = vsyncpa [#allocation4], 0  ;;  %s977_s0 = inlined_call_operand.vmem [shape: s32[2,1], index: 0, kind: input, shape index: {}]   ;;  %s978_s1 = inlined_call_operand.vmem [shape: f32[64,32], index: 1, kind: input, shape index: {}]   ;;  %s979_s2 = inlined_call_operand.vmem [shape: f32[2,2,32], index: 2, kind: input, shape index: {}, may-alias: {2,9}]   ;;  %s980_s3 = inlined_call_operand.vmem [shape: f32[2,2,32], index: 3, kind: input, shape index: {}, may-alias: {3,10}]   ;;  %s981_s4 = inlined_call_operand.hbm [shape: f32[2,64,128], index: 4, kind: input, shape index: {}]   ;;  %s982_s5 = inlined_call_operand.vmem [shape: f32[2,1,128], index: 5, kind: input, shape index: {}]   ;;  %s983_s6 = inlined_call_operand.vmem [shape: f32[32,128], index: 6, kind: input, shape index: {}]   ;;  %s984_s7 = inlined_call_operand.vmem [shape: f32[1,128], index: 7, kind: input, shape index: {}]   ;;  %s985_s8 = inlined_call_operand.hbm [shape: f32[2,128], index: 8, kind: output, shape index: {0}]   ;;  %s986_s9 = inlined_call_operand.vmem [shape: f32[2,2,32], index: 9, kind: output, shape index: {1}, may-alias: {2,9}]   ;;  %s987_s10 = inlined_call_operand.vmem [shape: f32[2,2,32], index: 10, kind: output, shape index: {2}, may-alias: {3,10}]  }
   0x1   :  { %17 = vsyncpa [#allocation5], 0  ;;  %s765_s13 = smov [#allocation3]   ;;  %s717_s17 = scalar_lea.hbm %s981_s4, 2048 }
   0x2   :  { %s31_s14 = sshll.u32 %s765_s13, 4  ;;  %p718_p0 = scmp.ne.s32.totalorder %s981_s4, %s717_s17  ;;  %s32_s14 = int_to_ptr.vmem [resolvable:$true] %s31_s14 }
   0x3   :  { %p721_p1 = scmp.lt.u32.totalorder %s717_s17, %s981_s4 }
   0x5   :  { %p723_p2 = pnand %p721_p1, %p718_p0 }
   0x7   :  { %726 = shalt.err (!%p723_p2)
}
   0x8   :  { %s727_s22 = scalar_lea.vmem %s32_s14, 2048  ;;  %p732_p4 = scmp.lt.s32.totalorder %s32_s14, %s32_s14 }
   0x9   :  { %p728_p3 = scmp.ne.s32.totalorder %s32_s14, %s727_s22  ;;  %p733_p5 = scmp.lt.s32.totalorder %s727_s22, %s727_s22 }
   0xb   :  { %p734_p6 = por %p733_p5, %p732_p4 }
   0xd   :  { %p735_p7 = pnand %p734_p6, %p728_p3 }
   0xf   :  { %738 = shalt.err (!%p735_p7)
}
  0x10   :  { %s766_s23 = smov 128   ;;  %s767_s24 = smov 8  }
  0x11   :  { %37 = dma.hbm_to_vmem [thread:$0]  %s981_s4, 2048, %s32_s14, [#allocation4], %s766_s23, %s766_s23, %s767_s24  }
  0x12   :  { %761 = dma.done.wait [#allocation4], 2048  }
  0x13   :  { %762 = vsyncadd [#allocation4], 4294965248  ;;  %v768_v0 = vmov 0   ;;  %v769_v1 = vmov 0.0|0.0   ;;  %v47_v2 = vld [vmem:[%s977_s0] sm:$0x3]  ;;  %v48_v23 = vlaneseq }
  0x14   :  { %700 = vset.pattern.permute.xlu0 %v768_v0  ;;  %647 = vmatprep.subr.bf16.mxu0 %v769_v1  ;;  %v56_v3 = vld [vmem:[%s978_s1] sm:$0xff]  ;;  %v57_v4 = vld [vmem:[%s978_s1 + $0x8] sm:$0xff]  ;;  %v58_v6 = vld [vmem:[%s978_s1 + $0x10] sm:$0xff]  ;;  %vm770_vm0 = vmmov 0   ;;  %v771_v9 = vmov 0.0   ;;  %s772_s21 = smov 32  }
  0x15   :  { %659 = vmatprep.subr.bf16.mxu1 %v769_v1  ;;  %51 = vperm.xlu0 %700, %v47_v2   ;;  %v648_v5 = vpack.c.bf16 %v57_v4, %v56_v3  ;;  %v59_v7 = vld [vmem:[%s978_s1 + $0x18] sm:$0xff]  ;;  %v60_v8 = vld [vmem:[%s978_s1 + $0x20] sm:$0xff]  ;;  %v153_v13 = vld [vmem:[#allocation3 + $0x8] sm:$0xff]  ;;  %v49_v24 = vand.u32 127, %v48_v23  ;;  %vm64_vm1 = vcmask 523264   ;;  %vm138_vm3 = vcmask 254976  }
  0x16   :  { %595 = vmatprep.mubr.msk.f32.mxu0 %vm770_vm0, %v771_v9  ;;  %614 = vmatprep.mubr.msk.f32.mxu1 %vm770_vm0, %v771_v9  ;;  %v651_v10 = vpack.c.bf16 %v59_v7, %v58_v6  ;;  %v143_v11 = vld [vmem:[%s979_s2] sm:$0x3]  ;;  %v152_v12 = vld [vmem:[#allocation3] sm:$0xff]  ;;  %v154_v16 = vld [vmem:[#allocation3 + $0x10] sm:$0xff]  ;;  %vm148_vm4 = vcmask 517376   ;;  %s773_s27 = smov 64  }
  0x17   :  { %649 = vmatpush3.bf16.msra.mxu0 %v648_v5  ;;  %v61_v14 = vld [vmem:[%s978_s1 + $0x28] sm:$0xff]  ;;  %v660_v15 = vpack.c.bf16 %v153_v13, %v152_v12  ;;  %v155_v17 = vld [vmem:[#allocation3 + $0x18] sm:$0xff]  ;;  %v62_v20 = vld [vmem:[%s978_s1 + $0x30] sm:$0xff]  ;;  %vm140_vm5 = vcmp.ge.s32.totalorder %v49_v24, 64  ;;  %vm141_vm6 = vcmp.lt.s32.totalorder %v49_v24, 96  ;;  %vm434_vm8 = vcmask 261120  }
  0x18   :  { %650 = vmatprep.subr.bf16.mxu0 %v769_v1  ;;  %v663_v18 = vpack.c.bf16 %v155_v17, %v154_v16  ;;  %v654_v19 = vpack.c.bf16 %v61_v14, %v60_v8  ;;  %v63_v21 = vld [vmem:[%s978_s1 + $0x38] sm:$0xff]  ;;  %v156_v27 = vld [vmem:[#allocation3 + $0x20] sm:$0xff]  ;;  %v157_v28 = vld [vmem:[#allocation3 + $0x28] sm:$0xff]  ;;  %s775_s28 = smov [#allocation6]  }
  0x19   :  { %145 = vrot.lane.b32.xlu0 %v143_v11, %s772_s21  ;;  %661 = vmatpush3.bf16.msra.mxu1 %v660_v15  ;;  %v657_v22 = vpack.c.bf16 %v63_v21, %v62_v20  ;;  %v666_v29 = vpack.c.bf16 %v157_v28, %v156_v27  ;;  %v158_v30 = vld [vmem:[#allocation3 + $0x30] sm:$0xff]  ;;  %v159_v31 = vld [vmem:[#allocation3 + $0x38] sm:$0xff]  ;;  %vm895_vm7 = vmand %vm140_vm5, %vm141_vm6  ;;  %s515_s29 = sshll.u32 %s775_s28, 4  ;;  %s516_s29 = int_to_ptr.vmem [resolvable:$true] %s515_s29 }
  0x1a   :  { %662 = vmatprep.subr.bf16.mxu1 %v769_v1  ;;  %v669_v32 = vpack.c.bf16 %v159_v31, %v158_v30  ;;  %v534_v37 = vld [vmem:[%s982_s5] ss:$0 sm:$0xff]  ;;  %v291_v55 = vld [vmem:[#allocation3 + $0x40] sm:$0xff]  ;;  %v292_v56 = vld [vmem:[#allocation3 + $0x48] sm:$0xff]  ;;  %p744_p9 = scmp.lt.s32.totalorder %s516_s29, %s516_s29 }
  0x1b   :  { %652 = vmatpush3.bf16.msra.mxu0 %v651_v10  ;;  %v151_v48 = vld [vmem:[%s980_s3] sm:$0x3]  ;;  %v672_v57 = vpack.c.bf16 %v292_v56, %v291_v55  ;;  %v293_v58 = vld [vmem:[#allocation3 + $0x50] sm:$0xff]  ;;  %v537_v62 = vld [vmem:[%s979_s2 + $0x2] sm:$0x3] }
  0x1c   :  { %653 = vmatprep.subr.bf16.mxu0 %v769_v1  ;;  %v294_v59 = vld [vmem:[#allocation3 + $0x58] sm:$0xff]  ;;  %v295_v63 = vld [vmem:[#allocation3 + $0x60] sm:$0xff]  ;;  %v296_v0 = vld [vmem:[#allocation3 + $0x68] sm:$0xff] }
  0x1d   :  { %664 = vmatpush3.bf16.msra.mxu1 %v663_v18  ;;  %v675_v60 = vpack.c.bf16 %v294_v59, %v293_v58  ;;  %v678_v2 = vpack.c.bf16 %v296_v0, %v295_v63  ;;  %v297_v3 = vld [vmem:[#allocation3 + $0x70] sm:$0xff]  ;;  %v298_v4 = vld [vmem:[#allocation3 + $0x78] sm:$0xff]  ;;  %v538_v6 = vld [vmem:[%s980_s3 + $0x2] sm:$0x3] }
  0x1e   :  { %665 = vmatprep.subr.bf16.mxu1 %v769_v1  ;;  %v681_v5 = vpack.c.bf16 %v298_v4, %v297_v3  ;;  %v540_v12 = vld [vmem:[%s982_s5 + $0x1] ss:$0 sm:$0xff]  ;;  %s774_s5 = smov 96   ;;  %v424_v30 = vld [vmem:[%s983_s6 + $0x8] sm:$0xff] }
  0x1f   :  { %655 = vmatpush3.bf16.msra.mxu0 %v654_v19 }
  0x20   :  { %656 = vmatprep.subr.bf16.mxu0 %v769_v1 }
  0x21   :  { %667 = vmatpush3.bf16.msra.mxu1 %v666_v29  ;;  %v423_v29 = vld [vmem:[%s983_s6] sm:$0xff] }
  0x22   :  { %668 = vmatprep.subr.bf16.mxu1 %v769_v1  ;;  %v684_v31 = vpack.c.bf16 %v424_v30, %v423_v29 }
  0x23   :  { %658 = vmatpush3.bf16.msra.mxu0 %v657_v22 }
  0x24   :  { %671 = vmatprep.subr.bf16.mxu0 %v769_v1 }
  0x25   :  { %670 = vmatpush3.bf16.msra.mxu1 %v669_v32  ;;  %v425_v32 = vld [vmem:[%s983_s6 + $0x10] sm:$0xff] }
  0x26   :  { %683 = vmatprep.subr.bf16.mxu1 %v769_v1 }
  0x94   :  { %v52_v25 = vpop.permute.xlu0 %51 }
  0x95   :  { %vm53_vm2 = vcmp.eq.s32.totalorder %v49_v24, %v52_v25 }
  0x96   :  { %v532_v26 = vsel %vm53_vm2, 1.0, %v771_v9 }
  0x97   :  { %596 = vmatmul.mubr.msk.f32.vlgmr.msra.gmra.mrb[0].mxu0 %vm64_vm1, %v532_v26 }
  0x98   :  { %633 = vmatprep.mubr.msk.f32.mxu0 %vm770_vm0, %v771_v9  ;;  %v146_v33 = vpop.permute.xlu0 %145  ;;  %673 = vmatpush3.bf16.msra.mxu0 %v672_v57 }
  0x99   :  { %674 = vmatprep.subr.bf16.mxu0 %v769_v1 }
  0x9c   :  { %676 = vmatpush3.bf16.msra.mxu0 %v675_v60 }
  0x9d   :  { %677 = vmatprep.subr.bf16.mxu0 %v769_v1 }
  0xa0   :  { %679 = vmatpush3.bf16.msra.mxu0 %v678_v2 }
  0xa1   :  { %680 = vmatprep.subr.bf16.mxu0 %v769_v1 }
  0xa4   :  { %682 = vmatpush3.bf16.msra.mxu0 %v681_v5 }
 0x16a   :  { %v134_v34 = vpop.f32.mrb[0].mxu0 }
 0x16b   :  { %139 = vst.msk [vmem:[#allocation2] sm:$0x3] %vm138_vm3, %v134_v34  ;;  %v597_v35 = vpop.f32.mrb[1].mxu0 }
 0x16c   :  { %149 = vst.msk [vmem:[#allocation2] sm:$0x3] %vm148_vm4, %v146_v33  ;;  %v426_v33 = vld [vmem:[%s983_s6 + $0x18] sm:$0xff] }
 0x16d   :  { %v687_v34 = vpack.c.bf16 %v426_v33, %v425_v32 }
 0x173   :  { %v150_v36 = vld [vmem:[#allocation2] sm:$0x3] }
 0x174   :  { %615 = vmatmul.mubr.msk.f32.vlgmr.msra.gmra.mrb[0].mxu1 %vm64_vm1, %v150_v36 }
 0x175   :  { %644 = vmatprep.mubr.msk.f32.mxu1 %vm770_vm0, %v771_v9  ;;  %685 = vmatpush3.bf16.msra.mxu1 %v684_v31 }
 0x176   :  { %686 = vmatprep.subr.bf16.mxu1 %v769_v1 }
 0x179   :  { %688 = vmatpush3.bf16.msra.mxu1 %v687_v34 }
 0x247   :  { %v236_v38 = vpop.f32.mrb[0].mxu1 }
 0x248   :  { %v237_v39 = vadd.f32 %v534_v37, %v236_v38  ;;  %v616_v40 = vpop.f32.mrb[1].mxu1 }
 0x249   :  { %v545_v40 = vld [vmem:[%s984_s7] ss:$0 sm:$0xff] }
 0x24a   :  { %v536_v41 = vmul.f32 -1.442695, %v237_v39 }
 0x24c   :  { %701 = vpow2.f32 %v536_v41 }
 0x24d   :  { %703 = vtanh.f32 %v237_v39 }
 0x256   :  { %v702_v42 = vpop.eup %701 }
 0x257   :  { %v244_v43 = vadd.f32 1.0, %v702_v42  ;;  %v704_v45 = vpop.eup %703 }
 0x259   :  { %705 = vrcp.f32 %v244_v43 }
 0x263   :  { %v706_v46 = vpop.eup %705 }
 0x264   :  { %v247_v47 = vsel %vm895_vm7, %v704_v45, %v706_v46 }
 0x265   :  { %254 = vrot.lane.b32.xlu1 %v247_v47, %s773_s27 }
 0x269   :  { %249 = vrot.lane.b32.xlu1 %v151_v48, %s772_s21 }
 0x2d7   :  { %v255_v49 = vpop.permute.xlu1 %254 }
 0x2d8   :  { %v257_v50 = vmul.f32 %v255_v49, %v247_v47 }
 0x2da   :  { %259 = vrot.lane.b32.xlu0 %v257_v50, %s772_s21 }
 0x2db   :  { %v250_v51 = vpop.permute.xlu1 %249 }
 0x2dc   :  { %v252_v52 = vmul.f32 %v250_v51, %v247_v47 }
 0x34c   :  { %v260_v53 = vpop.permute.xlu0 %259 }
 0x34d   :  { %v262_v54 = vadd.f32 %v260_v53, %v252_v52 }
 0x34f   :  { %707 = vtanh.f32 %v262_v54 }
 0x359   :  { %v708_v61 = vpop.eup %707 }
 0x35a   :  { %265 = vrot.lane.b32.xlu1 %v708_v61, %s773_s27 }
 0x35e   :  { %283 = vrot.lane.b32.xlu1 %v537_v62, %s772_s21 }
 0x362   :  { %389 = vrot.lane.b32.xlu1 %v538_v6, %s772_s21 }
 0x3cc   :  { %v266_v7 = vpop.permute.xlu1 %265 }
 0x3cd   :  { %v268_v8 = vmul.f32 %v266_v7, %v247_v47 }
 0x3cf   :  { %270 = vrot.lane.b32.xlu0 %v268_v8, %s772_s21 }
 0x3d0   :  { %v284_v9 = vpop.permute.xlu1 %283 }
 0x3d4   :  { %v390_v24 = vpop.permute.xlu1 %389 }
 0x441   :  { %v271_v10 = vpop.permute.xlu0 %270 }
 0x442   :  { %273 = vst.msk [vmem:[%s986_s9] sm:$0x3] %vm138_vm3, %v271_v10  ;;  %279 = vst.msk [vmem:[#allocation2] sm:$0x3] %vm138_vm3, %v271_v10 }
 0x443   :  { %286 = vst.msk [vmem:[#allocation2] sm:$0x3] %vm148_vm4, %v284_v9 }
 0x44a   :  { %v287_v11 = vld [vmem:[#allocation2] sm:$0x3] }
 0x44b   :  { %634 = vmatmul.mubr.msk.f32.vlgmr.msra.gmra.mrb[2].mxu0 %vm64_vm1, %v287_v11 }
 0x51e   :  { %v376_v13 = vpop.f32.mrb[2].mxu0 }
 0x51f   :  { %v377_v14 = vadd.f32 %v540_v12, %v376_v13  ;;  %v635_v15 = vpop.f32.mrb[3].mxu0 }
 0x521   :  { %v542_v16 = vmul.f32 -1.442695, %v377_v14 }
 0x523   :  { %709 = vpow2.f32 %v542_v16 }
 0x524   :  { %711 = vtanh.f32 %v377_v14 }
 0x52d   :  { %v710_v17 = vpop.eup %709 }
 0x52e   :  { %v384_v18 = vadd.f32 1.0, %v710_v17  ;;  %v712_v19 = vpop.eup %711 }
 0x530   :  { %713 = vrcp.f32 %v384_v18 }
 0x53a   :  { %v714_v20 = vpop.eup %713 }
 0x53b   :  { %v387_v21 = vsel %vm895_vm7, %v712_v19, %v714_v20 }
 0x53c   :  { %394 = vrot.lane.b32.xlu0 %v387_v21, %s773_s27  ;;  %v392_v25 = vmul.f32 %v390_v24, %v387_v21 }
 0x5ae   :  { %v395_v22 = vpop.permute.xlu0 %394 }
 0x5af   :  { %v397_v23 = vmul.f32 %v395_v22, %v387_v21 }
 0x5b1   :  { %399 = vrot.lane.b32.xlu0 %v397_v23, %s772_s21 }
 0x623   :  { %v400_v26 = vpop.permute.xlu0 %399 }
 0x624   :  { %v402_v27 = vadd.f32 %v400_v26, %v392_v25 }
 0x626   :  { %715 = vtanh.f32 %v402_v27 }
 0x630   :  { %v716_v28 = vpop.eup %715 }
 0x631   :  { %405 = vrot.lane.b32.xlu1 %v716_v28, %s773_s27 }
 0x635   :  { %275 = vrot.lane.b32.xlu1 %v262_v54, %s774_s5 }
 0x6a3   :  { %v406_v35 = vpop.permute.xlu1 %405 }
 0x6a4   :  { %v408_v36 = vmul.f32 %v406_v35, %v387_v21 }
 0x6a6   :  { %410 = vrot.lane.b32.xlu0 %v408_v36, %s772_s21 }
 0x6a7   :  { %v276_v37 = vpop.permute.xlu1 %275 }
 0x6a8   :  { %278 = vst.msk [vmem:[%s987_s10] sm:$0x3] %vm138_vm3, %v276_v37 }
 0x6aa   :  { %416 = vrot.lane.b32.xlu0 %v402_v27, %s774_s5 }
 0x718   :  { %v411_v1 = vpop.permute.xlu0 %410 }
 0x719   :  { %543 = vst.msk [vmem:[%s986_s9 + $0x2] sm:$0x3] %vm138_vm3, %v411_v1  ;;  %421 = vst.msk [vmem:[#allocation2] sm:$0x3] %vm138_vm3, %v411_v1  ;;  %s739_s9 = scalar_lea.vmem %s516_s29, 32 }
 0x71a   :  { %p740_p8 = scmp.ne.s32.totalorder %s516_s29, %s739_s9  ;;  %p745_p10 = scmp.lt.s32.totalorder %s739_s9, %s739_s9 }
 0x71c   :  { %v417_v38 = vpop.permute.xlu0 %416  ;;  %p746_p11 = por %p745_p10, %p744_p9 }
 0x71d   :  { %544 = vst.msk [vmem:[%s987_s10 + $0x2] sm:$0x3] %vm138_vm3, %v417_v38 }
 0x71e   :  { %p747_p12 = pnand %p746_p11, %p740_p8 }
 0x720   :  { %v422_v39 = vld [vmem:[#allocation2] sm:$0x3] }
 0x721   :  { %645 = vmatmul.mubr.msk.f32.vlgmr.msra.gmra.mrb[2].mxu1 %vm434_vm8, %v422_v39 }
 0x7f4   :  { %v504_v41 = vpop.f32.mrb[2].mxu1 }
 0x7f5   :  { %v505_v42 = vadd.f32 %v545_v40, %v504_v41  ;;  %v646_v43 = vpop.f32.mrb[3].mxu1 }
 0x7f7   :  { %508 = vst [vmem:[#allocation6] sm:$0x3] %v505_v42 }
 0x7f8   :  { %750 = shalt.err (!%p747_p12)
}
 0x7f9   :  { %s751_s11 = scalar_lea.hbm %s985_s8, 32 }
 0x7fa   :  { %p752_p13 = scmp.ne.s32.totalorder %s985_s8, %s751_s11  ;;  %p755_p0 = scmp.lt.u32.totalorder %s751_s11, %s985_s8 }
 0x7fc   :  { %p757_p1 = pnand %p755_p0, %p752_p13 }
 0x7fe   :  { %760 = shalt.err (!%p757_p1)
}
 0x7ff   :  { %518 = dma.vmem_to_hbm [thread:$0]  %s516_s29, 32, %s985_s8, [#allocation5]  }
 0x800   :  { %763 = dma.done.wait [#allocation5], 32  }
 0x801   :  { %764 = vsyncadd [#allocation5], 4294967264 }
 0x802   :  { %530 = vsyncpa [#allocation4], 1 }
 0x803   :  { %531 = vsyncpa [#allocation5], 1 }

</bundles_post_ra>
